<compile_context>
chip_gen: v7x
topology: tpu7x:2x2x1
jax: 0.10.0
libtpu: 0.0.40
codegen_flags: <defaults>
</compile_context>

<pallas_src>
import math
import functools

import jax
import jax.numpy as jnp
from jax.experimental import pallas as pl
from jax.experimental.pallas import tpu as pltpu


# ----------------------------------------------------------------------------
# helpers
# ----------------------------------------------------------------------------
def _tile(dim, target, align):
    """Largest multiple of `align` that divides `dim` and is <= target.
    Falls back to the full dim (always a legal block size)."""
    if dim <= target:
        return dim
    if dim % align != 0:
        return dim
    t = (target // align) * align
    while t >= align:
        if dim % t == 0:
            return t
        t -= align
    return dim


# ----------------------------------------------------------------------------
# Linear:  y = x @ W + b   (W already stored as (in, out))
# ----------------------------------------------------------------------------
def _linear_kernel(x_ref, w_ref, b_ref, o_ref, *, matmul_dtype):
    acc = jnp.dot(x_ref[...].astype(matmul_dtype), w_ref[...],
                  preferred_element_type=jnp.float32)
    o_ref[...] = (acc + b_ref[...]).astype(o_ref.dtype)


def _linear(x, w, b, *, matmul_dtype):
    M, K = x.shape
    K2, N = w.shape
    assert K == K2
    tm = _tile(M, 256, 8)
    tn = _tile(N, 512, 128)
    b2 = b.reshape(1, N).astype(jnp.float32)

    kernel = functools.partial(_linear_kernel, matmul_dtype=matmul_dtype)
    return pl.pallas_call(
        kernel,
        out_shape=jax.ShapeDtypeStruct((M, N), jnp.float32),
        grid_spec=pltpu.PrefetchScalarGridSpec(
            num_scalar_prefetch=0,
            grid=(M // tm, N // tn),
            in_specs=[
                pl.BlockSpec((tm, K), lambda i, j: (i, 0)),   # activations
                pl.BlockSpec((K, tn), lambda i, j: (0, j)),   # weight (in,out)
                pl.BlockSpec((1, tn), lambda i, j: (0, j)),   # bias
            ],
            out_specs=pl.BlockSpec((tm, tn), lambda i, j: (i, j)),
        ),
        compiler_params=pltpu.CompilerParams(
            dimension_semantics=("parallel", "parallel"),
            vmem_limit_bytes=48 * 1024 * 1024),
    )(x, w, b2)


# ----------------------------------------------------------------------------
# Flash attention with causal masking (online softmax)
# ----------------------------------------------------------------------------
def _flash_attn_kernel(q_ref, k_ref, v_ref, o_ref, m_sc, l_sc, acc_sc, *,
                       tq, tkv, scale, matmul_dtype):
    qi = pl.program_id(1)
    ki = pl.program_id(2)
    # Last kv tile intersecting the causal region of this q tile.
    last_k = ((qi + 1) * tq - 1) // tkv

    @pl.when(ki == 0)
    def _init():
        m_sc[...] = jnp.full(m_sc.shape, -jnp.inf, dtype=m_sc.dtype)
        l_sc[...] = jnp.zeros(l_sc.shape, dtype=l_sc.dtype)
        acc_sc[...] = jnp.zeros(acc_sc.shape, dtype=acc_sc.dtype)

    @pl.when(ki <= last_k)          # skip tiles fully above the diagonal
    def _compute():
        q = (q_ref[0] * scale).astype(matmul_dtype)        # (tq, D)
        k = k_ref[0].astype(matmul_dtype)                  # (tkv, D)
        # q @ k^T without materializing a transpose.
        s = jax.lax.dot_general(q, k, (((1,), (1,)), ((), ())),
                                preferred_element_type=jnp.float32)  # (tq,tkv)

        # Tile-local causal mask derived from tile indices.
        row = qi * tq + jax.lax.broadcasted_iota(jnp.int32, (tq, tkv), 0)
        col = ki * tkv + jax.lax.broadcasted_iota(jnp.int32, (tq, tkv), 1)
        s = jnp.where(row >= col, s, -jnp.inf)

        m_prev = m_sc[...]
        m_new = jnp.maximum(m_prev, jnp.max(s, axis=-1, keepdims=True))
        alpha = jnp.exp(m_prev - m_new)                    # fp32 EUP
        p = jnp.exp(s - m_new)                             # fp32 EUP
        l_sc[...] = alpha * l_sc[...] + jnp.sum(p, axis=-1, keepdims=True)
        acc_sc[...] = alpha * acc_sc[...] + jnp.dot(
            p.astype(matmul_dtype), v_ref[0].astype(matmul_dtype),
            preferred_element_type=jnp.float32)
        m_sc[...] = m_new

    @pl.when(ki == last_k)
    def _finalize():
        inv_l = pl.reciprocal(l_sc[...], approx=True)
        o_ref[0] = (acc_sc[...] * inv_l).astype(o_ref.dtype)


def _flash_attention(q, k, v, *, matmul_dtype):
    BH, T, D = q.shape
    tq = _tile(T, 128, 8)
    tkv = _tile(T, 128, 8)
    nq, nkv = T // tq, T // tkv
    scale = 1.0 / math.sqrt(D)

    def q_map(b, qi, ki):
        return (b, qi, 0)

    def kv_map(b, qi, ki):
        # Clamp so skipped (above-diagonal) steps re-use the previous block
        # -> Pallas elides the DMA entirely.
        last_k = ((qi + 1) * tq - 1) // tkv
        return (b, jnp.minimum(ki, last_k), 0)

    kernel = functools.partial(_flash_attn_kernel, tq=tq, tkv=tkv,
                               scale=scale, matmul_dtype=matmul_dtype)
    return pl.pallas_call(
        kernel,
        out_shape=jax.ShapeDtypeStruct((BH, T, D), jnp.float32),
        grid_spec=pltpu.PrefetchScalarGridSpec(
            num_scalar_prefetch=0,
            grid=(BH, nq, nkv),
            in_specs=[
                pl.BlockSpec((1, tq, D), q_map),
                pl.BlockSpec((1, tkv, D), kv_map),
                pl.BlockSpec((1, tkv, D), kv_map),
            ],
            out_specs=pl.BlockSpec((1, tq, D), q_map),
            scratch_shapes=[
                pltpu.VMEM((tq, 1), jnp.float32),   # running max m
                pltpu.VMEM((tq, 1), jnp.float32),   # running sum l
                pltpu.VMEM((tq, D), jnp.float32),   # output accumulator
            ]),
        compiler_params=pltpu.CompilerParams(
            dimension_semantics=("parallel", "parallel", "arbitrary"),
            vmem_limit_bytes=48 * 1024 * 1024),
    )(q, k, v)


# ----------------------------------------------------------------------------
# Full module forward
# ----------------------------------------------------------------------------
def causal_self_attention(x, params, n_head, *, matmul_dtype=jnp.float32):
    """x: (B, T, C) f32. params: PyTorch-style Linear weights (out, in) + biases."""
    B, T, C = x.shape
    H = n_head
    assert C % H == 0
    D = C // H

    # Pre-transpose to (in, out) and fuse q/k/v into one (C, 3C) weight.
    wqkv = jnp.concatenate(
        [params["wq"].T, params["wk"].T, params["wv"].T], axis=1).astype(matmul_dtype)
    bqkv = jnp.concatenate([params["bq"], params["bk"], params["bv"]])
    wp = params["wp"].T.astype(matmul_dtype)
    bp = params["bp"]

    # Fused QKV projection (one kernel, one pass over x).
    x2d = x.reshape(B * T, C)
    qkv = _linear(x2d, wqkv, bqkv, matmul_dtype=matmul_dtype)     # (B*T, 3C) f32

    # Layout plumbing (wrapper-side): split heads -> (B*H, T, D).
    qkv = qkv.reshape(B, T, 3, H, D)
    q = qkv[:, :, 0].transpose(0, 2, 1, 3).reshape(B * H, T, D)
    k = qkv[:, :, 1].transpose(0, 2, 1, 3).reshape(B * H, T, D)
    v = qkv[:, :, 2].transpose(0, 2, 1, 3).reshape(B * H, T, D)

    # TODO(synk): attn_drop (nn.Dropout on attention probs) omitted -- eval-mode identity.
    y = _flash_attention(q, k, v, matmul_dtype=matmul_dtype)      # (B*H, T, D)

    # Merge heads back: (B, T, C).
    y2d = y.reshape(B, H, T, D).transpose(0, 2, 1, 3).reshape(B * T, C)

    # Output projection.
    out = _linear(y2d, wp, bp, matmul_dtype=matmul_dtype)         # (B*T, C)
    # TODO(synk): resid_drop (nn.Dropout) omitted -- eval-mode identity.
    return out.reshape(B, T, C).astype(x.dtype)


# ----------------------------------------------------------------------------
# Pure-JAX reference replicating the PyTorch forward (dropout = identity)
# ----------------------------------------------------------------------------
def _reference(x, params, n_head):
    B, T, C = x.shape
    D = C // n_head

    def lin(x, w, b):
        return x @ w.T + b

    q = lin(x, params["wq"], params["bq"]).reshape(B, T, n_head, D).transpose(0, 2, 1, 3)
    k = lin(x, params["wk"], params["bk"]).reshape(B, T, n_head, D).transpose(0, 2, 1, 3)
    v = lin(x, params["wv"], params["bv"]).reshape(B, T, n_head, D).transpose(0, 2, 1, 3)

    att = jnp.einsum("bhtd,bhsd->bhts", q, k) * (1.0 / math.sqrt(D))
    mask = jnp.tril(jnp.ones((T, T), dtype=bool))
    att = jnp.where(mask[None, None], att, -jnp.inf)
    att = jax.nn.softmax(att, axis=-1)
    y = jnp.einsum("bhts,bhsd->bhtd", att, v)
    y = y.transpose(0, 2, 1, 3).reshape(B, T, C)
    return lin(y, params["wp"], params["bp"])


if __name__ == "__main__":
    # Small config consistent with the module: n_embd % n_head == 0.
    B, T, C, n_head = 2, 8, 32, 4

    key = jax.random.PRNGKey(0)
    keys = jax.random.split(key, 9)
    scale = 0.02
    params = {
        "wq": scale * jax.random.normal(keys[0], (C, C), jnp.float32),
        "bq": scale * jax.random.normal(keys[1], (C,), jnp.float32),
        "wk": scale * jax.random.normal(keys[2], (C, C), jnp.float32),
        "bk": scale * jax.random.normal(keys[3], (C,), jnp.float32),
        "wv": scale * jax.random.normal(keys[4], (C, C), jnp.float32),
        "bv": scale * jax.random.normal(keys[5], (C,), jnp.float32),
        "wp": scale * jax.random.normal(keys[6], (C, C), jnp.float32),
        "bp": scale * jax.random.normal(keys[7], (C,), jnp.float32),
    }
    x = jax.random.normal(keys[8], (B, T, C), jnp.float32)

    ref = _reference(x, params, n_head)

    # fp32 MXU path (tight check; approx reciprocal only in the final normalize).
    out = causal_self_attention(x, params, n_head, matmul_dtype=jnp.float32)
    out = jax.block_until_ready(out)
    assert out.shape == (B, T, C)
    assert jnp.allclose(out, ref, atol=2e-3, rtol=2e-3), "fp32 mismatch vs reference"

    # bf16 MXU operands with fp32 accumulation (perf path for v6e/v7x).
    out_bf16 = causal_self_attention(x, params, n_head, matmul_dtype=jnp.bfloat16)
    out_bf16 = jax.block_until_ready(out_bf16)
    assert jnp.allclose(out_bf16, ref, atol=5e-2, rtol=5e-2), "bf16 mismatch vs reference"

    print("KERNEL_OK")
</pallas_src>

<mosaic_0001>
module attributes {stable_mosaic.version = 11 : i64} {
  func.func @_linear_kernel(%arg0: i32, %arg1: i32, %arg2: memref<16x32xf32, #tpu.memory_space<vmem>>, %arg3: memref<32x96xf32, #tpu.memory_space<vmem>>, %arg4: memref<1x96xf32, #tpu.memory_space<vmem>>, %arg5: memref<16x96xf32, #tpu.memory_space<vmem>>) attributes {dimension_semantics = [#tpu.dimension_semantics<parallel>, #tpu.dimension_semantics<parallel>], iteration_bounds = array<i64: 1, 1>, scalar_prefetch = 0 : i64, scratch_operands = 0 : i64, tpu.core_type = #tpu.core_type<tc>, window_params = [{transform_indices = @transform_0, window_bounds = array<i64: 16, 32>}, {transform_indices = @transform_1, window_bounds = array<i64: 32, 96>}, {transform_indices = @transform_2, window_bounds = array<i64: 1, 96>}, {transform_indices = @transform_3, window_bounds = array<i64: 16, 96>}]} {
    %c0 = arith.constant 0 : index
    %c0_0 = arith.constant 0 : index
    %0 = vector.load %arg2[%c0, %c0_0] : memref<16x32xf32, #tpu.memory_space<vmem>>, vector<16x32xf32>
    %c0_1 = arith.constant 0 : index
    %c0_2 = arith.constant 0 : index
    %1 = vector.load %arg3[%c0_1, %c0_2] : memref<32x96xf32, #tpu.memory_space<vmem>>, vector<32x96xf32>
    %cst = arith.constant dense<0.000000e+00> : vector<16x96xf32>
    %2 = tpu.matmul %0, %1, %cst {dimension_numbers = #tpu.dot_dimension_numbers<[1], [0], [0], [1], [0, 0, 1, 1], [], []>} : vector<16x32xf32>, vector<32x96xf32>, vector<16x96xf32> -> vector<16x96xf32>
    %c0_3 = arith.constant 0 : index
    %c0_4 = arith.constant 0 : index
    %3 = vector.load %arg4[%c0_3, %c0_4] : memref<1x96xf32, #tpu.memory_space<vmem>>, vector<1x96xf32>
    %4 = vector.broadcast %3 : vector<1x96xf32> to vector<16x96xf32>
    %5 = arith.addf %2, %4 : vector<16x96xf32>
    %c0_5 = arith.constant 0 : index
    %c0_6 = arith.constant 0 : index
    %6 = vector.load %arg5[%c0_5, %c0_6] : memref<16x96xf32, #tpu.memory_space<vmem>>, vector<16x96xf32>
    tpu.vector_store %arg5[%c0_5, %c0_6], %5 {strides = array<i32>} : memref<16x96xf32, #tpu.memory_space<vmem>>, vector<16x96xf32>,
    return
  }
  func.func @transform_0(%arg0: i32, %arg1: i32) -> (i32, i32) {
    %c0_i32 = arith.constant 0 : i32
    %c0_i32_0 = arith.constant 0 : i32
    return %arg0, %c0_i32 : i32, i32
  }
  func.func @transform_1(%arg0: i32, %arg1: i32) -> (i32, i32) {
    %c0_i32 = arith.constant 0 : i32
    %c0_i32_0 = arith.constant 0 : i32
    return %c0_i32, %arg1 : i32, i32
  }
  func.func @transform_2(%arg0: i32, %arg1: i32) -> (i32, i32) {
    %c0_i32 = arith.constant 0 : i32
    %c0_i32_0 = arith.constant 0 : i32
    return %c0_i32, %arg1 : i32, i32
  }
  func.func @transform_3(%arg0: i32, %arg1: i32) -> (i32, i32) {
    %c0_i32 = arith.constant 0 : i32
    return %arg0, %arg1 : i32, i32
  }
}

</mosaic_0001>

<bundles_post_ra>
// kernel: tpu_custom_call.1
= control target key start
LH: loop header
LB: loop body
LE: loop exit
PB: predicated region body
PF: predicated region fallthrough
CT: control target
= control target key end

     0   :  { %8 = vsyncpa [#allocation3], 0  ;;  %s337_s0 = inlined_call_operand.hbm [shape: f32[16,32], index: 0, kind: input, shape index: {}]   ;;  %s338_s1 = inlined_call_operand.hbm [shape: f32[32,96], index: 1, kind: input, shape index: {}]   ;;  %s339_s2 = inlined_call_operand.vmem [shape: f32[1,96], index: 2, kind: input, shape index: {}]   ;;  %s340_s3 = inlined_call_operand.hbm [shape: f32[16,96], index: 3, kind: output, shape index: {}]  }
   0x1   :  { %9 = vsyncpa [#allocation6], 0 }
   0x2   :  { %10 = vsyncpa [#allocation4], 0  ;;  %s264_s12 = smov [#allocation2]   ;;  %s192_s16 = scalar_lea.hbm %s337_s0, 256 }
   0x3   :  { %s16_s13 = sshll.u32 %s264_s12, 4  ;;  %p193_p0 = scmp.ne.s32.totalorder %s337_s0, %s192_s16  ;;  %s17_s13 = int_to_ptr.vmem [resolvable:$true] %s16_s13 }
   0x4   :  { %p196_p1 = scmp.lt.u32.totalorder %s192_s16, %s337_s0 }
   0x6   :  { %p198_p2 = pnand %p196_p1, %p193_p0 }
   0x8   :  { %201 = shalt.err (!%p198_p2)
}
   0x9   :  { %s202_s21 = scalar_lea.vmem %s17_s13, 256  ;;  %p207_p4 = scmp.lt.s32.totalorder %s17_s13, %s17_s13 }
   0xa   :  { %p203_p3 = scmp.ne.s32.totalorder %s17_s13, %s202_s21  ;;  %p208_p5 = scmp.lt.s32.totalorder %s202_s21, %s202_s21 }
   0xc   :  { %p209_p6 = por %p208_p5, %p207_p4 }
   0xe   :  { %p210_p7 = pnand %p209_p6, %p203_p3 }
  0x10   :  { %213 = shalt.err (!%p210_p7)
}
  0x11   :  { %s265_s22 = smov 128   ;;  %s266_s23 = smov 8  }
  0x12   :  { %22 = dma.hbm_to_vmem [thread:$0]  %s337_s0, 256, %s17_s13, [#allocation3], %s265_s22, %s265_s22, %s266_s23  }
  0x13   :  { %s267_s26 = smov [#allocation5]   ;;  %s214_s30 = scalar_lea.hbm %s338_s1, 512 }
  0x14   :  { %s28_s27 = sshll.u32 %s267_s26, 4  ;;  %p215_p8 = scmp.ne.s32.totalorder %s338_s1, %s214_s30  ;;  %s29_s27 = int_to_ptr.vmem [resolvable:$true] %s28_s27 }
  0x15   :  { %p218_p9 = scmp.lt.u32.totalorder %s214_s30, %s338_s1 }
  0x17   :  { %p220_p10 = pnand %p218_p9, %p215_p8 }
  0x19   :  { %223 = shalt.err (!%p220_p10)
}
  0x1a   :  { %s224_s8 = scalar_lea.vmem %s29_s27, 512  ;;  %p229_p12 = scmp.lt.s32.totalorder %s29_s27, %s29_s27 }
  0x1b   :  { %p225_p11 = scmp.ne.s32.totalorder %s29_s27, %s224_s8  ;;  %p230_p13 = scmp.lt.s32.totalorder %s224_s8, %s224_s8 }
  0x1d   :  { %p231_p0 = por %p230_p13, %p229_p12 }
  0x1f   :  { %p232_p1 = pnand %p231_p0, %p225_p11 }
  0x21   :  { %235 = shalt.err (!%p232_p1)
}
  0x22   :  { %34 = dma.hbm_to_vmem [thread:$0]  %s338_s1, 512, %s29_s27, [#allocation6], %s265_s22, %s265_s22, %s266_s23  }
  0x23   :  { %258 = dma.done.wait [#allocation3], 256  }
  0x24   :  { %259 = vsyncadd [#allocation3], 4294967040 }
  0x25   :  { %260 = dma.done.wait [#allocation6], 512  }
  0x26   :  { %261 = vsyncadd [#allocation6], 4294966784  ;;  %vm56_vm0 = vcmask 261120   ;;  %v45_v0 = vld [vmem:[#allocation5] sm:$0xff]  ;;  %v46_v1 = vld [vmem:[#allocation5 + $0x8] sm:$0xff]  ;;  %s268_s11 = smov [#allocation7]  }
  0x27   :  { %v47_v2 = vld [vmem:[#allocation5 + $0x10] sm:$0xff]  ;;  %v179_v3 = vpack.c.bf16 %v46_v1, %v45_v0  ;;  %v48_v4 = vld [vmem:[#allocation5 + $0x18] sm:$0xff]  ;;  %s146_s12 = sshll.u32 %s268_s11, 4  ;;  %vm138_vm1 = vcmask 785408   ;;  %s147_s12 = int_to_ptr.vmem [resolvable:$true] %s146_s12 }
  0x28   :  { %v43_v5 = vld [vmem:[#allocation2] sm:$0xff]  ;;  %v183_v6 = vpack.c.bf16 %v48_v4, %v47_v2  ;;  %v44_v7 = vld [vmem:[#allocation2 + $0x8] sm:$0xff]  ;;  %s236_s13 = scalar_lea.vmem %s147_s12, 256  ;;  %p241_p3 = scmp.lt.s32.totalorder %s147_s12, %s147_s12 }
  0x29   :  { %176 = vmatprep.mubr.msk.f32.mxu0 %vm56_vm0, %v43_v5  ;;  %180 = vmatprep.subr.bf16.mxu0 %v179_v3  ;;  %v159_v8 = vld [vmem:[%s339_s2] ss:$0 sm:$0xff]  ;;  %p237_p2 = scmp.ne.s32.totalorder %s147_s12, %s236_s13  ;;  %p242_p4 = scmp.lt.s32.totalorder %s236_s13, %s236_s13 }
  0x2a   :  { %182 = vmatpush3.bf16.msra.mxu0 %v179_v3 }
  0x2b   :  { %184 = vmatprep.subr.bf16.mxu0 %v183_v6  ;;  %p243_p5 = por %p242_p4, %p241_p3 }
  0x2d   :  { %p244_p6 = pnand %p243_p5, %p237_p2 }
  0x2e   :  { %186 = vmatpush3.bf16.msra.mxu0 %v183_v6 }
  0x31   :  { %177 = vmatmul.mubr.msk.f32.vlgmr.msra.gmra.mrb[0].mxu0 %vm56_vm0, %v44_v7 }
 0x104   :  { %v178_v9 = vpop.f32.mrb[0].mxu0 }
 0x105   :  { %v135_v10 = vadd.f32 %v178_v9, %v159_v8  ;;  %v129_v11 = vpop.f32.mrb[1].mxu0 }
 0x106   :  { %v130_v12 = vadd.f32 %v159_v8, %v129_v11 }
 0x107   :  { %140 = vst.msk [vmem:[#allocation7 + $0x8] sm:$0xff] %vm138_vm1, %v135_v10 }
 0x108   :  { %139 = vst.msk [vmem:[#allocation7] sm:$0xff] %vm138_vm1, %v130_v12 }
 0x109   :  { %247 = shalt.err (!%p244_p6)
}
 0x10a   :  { %s248_s2 = scalar_lea.hbm %s340_s3, 256 }
 0x10b   :  { %p249_p7 = scmp.ne.s32.totalorder %s340_s3, %s248_s2  ;;  %p252_p8 = scmp.lt.u32.totalorder %s248_s2, %s340_s3 }
 0x10d   :  { %p254_p9 = pnand %p252_p8, %p249_p7 }
 0x10f   :  { %257 = shalt.err (!%p254_p9)
}
 0x110   :  { %152 = dma.vmem_to_hbm [thread:$0]  %s147_s12, 256, %s340_s3, [#allocation4], %s265_s22, %s265_s22, %s266_s23  }
 0x111   :  { %262 = dma.done.wait [#allocation4], 256  }
 0x112   :  { %263 = vsyncadd [#allocation4], 4294967040 }
 0x113   :  { %156 = vsyncpa [#allocation3], 1 }
 0x114   :  { %157 = vsyncpa [#allocation6], 1 }
 0x115   :  { %158 = vsyncpa [#allocation4], 1 }

</bundles_post_ra>
